<compile_context>
chip_gen: v5e
topology: v5e:2x2
jax: 0.10.0
libtpu: 0.0.40
codegen_flags: <defaults>
</compile_context>

<pallas_src>
import math
import functools

import jax
import jax.numpy as jnp
from jax.experimental import pallas as pl
from jax.experimental.pallas import tpu as pltpu

_LANE = 128
_MAX_TILE_BYTES = 4 << 20     # ~4 MiB/tile; 2 in + 2 out live tiles ~= 16 MiB
_VMEM_LIMIT_BYTES = 48 << 20  # raised scoped VMEM; still safe on v7x (64 MiB)


def _round_up(x, m):
    return ((x + m - 1) // m) * m


def _cosine_cutoff_kernel(d_ref, o_ref, *, cutoff_lower, cutoff_upper):
    # Compute in f32 regardless of input dtype (v5e VPU/EUP have no bf16 path).
    d = d_ref[...].astype(jnp.float32)
    pi = math.pi
    if cutoff_lower > 0:
        # arg = pi*(2*(d-lo)/(hi-lo)+1)  ==  d*scale + bias  (constants folded)
        scale = 2.0 * pi / (cutoff_upper - cutoff_lower)
        bias = pi - cutoff_lower * scale
        c = 0.5 * (jnp.cos(d * scale + bias) + 1.0)
        mask = (d < cutoff_upper) & (d > cutoff_lower)
    else:
        c = 0.5 * (jnp.cos(d * (pi / cutoff_upper)) + 1.0)
        mask = d < cutoff_upper
    o_ref[...] = jnp.where(mask, c, 0.0).astype(o_ref.dtype)


def cosine_cutoff(distances, cutoff_lower=0.0, cutoff_upper=5.0):
    """Pallas TPU implementation of CosineCutoff.forward.

    Accepts any shape/float dtype; returns same shape/dtype.
    """
    orig_shape = distances.shape
    dtype = distances.dtype
    flat = jnp.ravel(distances)
    n = flat.shape[0]
    if n == 0:
        return distances

    itemsize = jnp.dtype(dtype).itemsize
    # sublane packing requirement: 8 rows (f32), 16 (bf16/f16), 32 (8-bit)
    sublane = 8 * max(1, 4 // itemsize)

    # Lane-dense columns: wide (1024) for large inputs, 128 for small ones.
    cols = 8 * _LANE if n >= (1 << 20) else _LANE
    rows = -(-n // cols)

    # Biggest row-tile that keeps 4 live buffers well inside VMEM on every
    # generation (re-derived for v7x's 64 MiB physical VMEM), floored to the
    # sublane packing multiple, clamped to the (padded) row count.
    block_rows = _MAX_TILE_BYTES // (cols * itemsize)
    block_rows = max(sublane, (block_rows // sublane) * sublane)
    block_rows = min(block_rows, _round_up(rows, sublane))

    rows_padded = _round_up(rows, block_rows)
    n_padded = rows_padded * cols
    if n_padded != n:
        flat = jnp.pad(flat, (0, n_padded - n))  # pad values sliced off below
    slab = flat.reshape(rows_padded, cols)

    grid = (rows_padded // block_rows,)

    kernel = functools.partial(
        _cosine_cutoff_kernel,
        cutoff_lower=float(cutoff_lower),
        cutoff_upper=float(cutoff_upper),
    )

    out = pl.pallas_call(
        kernel,
        out_shape=jax.ShapeDtypeStruct((rows_padded, cols), dtype),
        grid_spec=pltpu.PrefetchScalarGridSpec(
            num_scalar_prefetch=0,
            grid=grid,
            in_specs=[pl.BlockSpec((block_rows, cols), lambda i: (i, 0))],
            out_specs=pl.BlockSpec((block_rows, cols), lambda i: (i, 0)),
        ),
        compiler_params=pltpu.CompilerParams(
            dimension_semantics=("parallel",),   # grid splits across v7x's 2 TCs
            vmem_limit_bytes=_VMEM_LIMIT_BYTES,
        ),
    )(slab)

    return out.reshape(-1)[:n].reshape(orig_shape)


def _reference(distances, cutoff_lower, cutoff_upper):
    pi = math.pi
    d = distances.astype(jnp.float32)
    if cutoff_lower > 0:
        c = 0.5 * (jnp.cos(pi * (2 * (d - cutoff_lower) /
                                 (cutoff_upper - cutoff_lower) + 1.0)) + 1.0)
        c = c * (d < cutoff_upper).astype(jnp.float32)
        c = c * (d > cutoff_lower).astype(jnp.float32)
    else:
        c = 0.5 * (jnp.cos(d * pi / cutoff_upper) + 1.0)
        c = c * (d < cutoff_upper).astype(jnp.float32)
    return c.astype(distances.dtype)


if __name__ == "__main__":
    key = jax.random.PRNGKey(0)
    k1, k2 = jax.random.split(key)

    # Small edge-distance batch: 16 "graphs" x 128 edges (lane-dense already).
    distances = jax.random.uniform(
        k1, (16, 128), dtype=jnp.float32, minval=0.0, maxval=7.0
    )

    # Case 1: default module config (cutoff_lower=0.0, cutoff_upper=5.0)
    out0 = jax.block_until_ready(cosine_cutoff(distances, 0.0, 5.0))
    ref0 = _reference(distances, 0.0, 5.0)
    assert jnp.allclose(out0, ref0, atol=1e-6, rtol=1e-6)

    # Case 2: nonzero lower cutoff branch
    out1 = jax.block_until_ready(cosine_cutoff(distances, 1.0, 5.0))
    ref1 = _reference(distances, 1.0, 5.0)
    assert jnp.allclose(out1, ref1, atol=1e-6, rtol=1e-6)

    # Case 3: ragged, non-lane-aligned shape exercises the pad/reshape path.
    ragged = jax.random.uniform(
        k2, (7, 53), dtype=jnp.float32, minval=0.0, maxval=7.0
    )
    out2 = jax.block_until_ready(cosine_cutoff(ragged, 0.0, 5.0))
    ref2 = _reference(ragged, 0.0, 5.0)
    assert out2.shape == ragged.shape
    assert jnp.allclose(out2, ref2, atol=1e-6, rtol=1e-6)

    print("KERNEL_OK")
</pallas_src>

<mosaic_0001>
module attributes {stable_mosaic.version = 11 : i64} {
  func.func @_cosine_cutoff_kernel(%arg0: i32, %arg1: memref<16x128xf32, #tpu.memory_space<vmem>>, %arg2: memref<16x128xf32, #tpu.memory_space<vmem>>) attributes {dimension_semantics = [#tpu.dimension_semantics<parallel>], iteration_bounds = array<i64: 1>, scalar_prefetch = 0 : i64, scratch_operands = 0 : i64, tpu.core_type = #tpu.core_type<tc>, window_params = [{transform_indices = @transform_0, window_bounds = array<i64: 16, 128>}, {transform_indices = @transform_1, window_bounds = array<i64: 16, 128>}]} {
    %c0 = arith.constant 0 : index
    %c0_0 = arith.constant 0 : index
    %0 = vector.load %arg1[%c0, %c0_0] : memref<16x128xf32, #tpu.memory_space<vmem>>, vector<16x128xf32>
    %cst = arith.constant 0.628318548 : f32
    %1 = vector.broadcast %cst : f32 to vector<16x128xf32>
    %2 = arith.mulf %0, %1 : vector<16x128xf32>
    %3 = math.cos %2 : vector<16x128xf32>
    %cst_1 = arith.constant 1.000000e+00 : f32
    %4 = vector.broadcast %cst_1 : f32 to vector<16x128xf32>
    %5 = arith.addf %3, %4 : vector<16x128xf32>
    %cst_2 = arith.constant 5.000000e-01 : f32
    %6 = vector.broadcast %cst_2 : f32 to vector<16x128xf32>
    %7 = arith.mulf %6, %5 : vector<16x128xf32>
    %cst_3 = arith.constant 5.000000e+00 : f32
    %8 = vector.broadcast %cst_3 : f32 to vector<16x128xf32>
    %9 = arith.cmpf olt, %0, %8 : vector<16x128xf32>
    %cst_4 = arith.constant 0.000000e+00 : f32
    %10 = vector.broadcast %cst_4 : f32 to vector<16x128xf32>
    %11 = arith.select %9, %7, %10 : vector<16x128xi1>, vector<16x128xf32>
    %c0_5 = arith.constant 0 : index
    %c0_6 = arith.constant 0 : index
    %12 = vector.load %arg2[%c0_5, %c0_6] : memref<16x128xf32, #tpu.memory_space<vmem>>, vector<16x128xf32>
    tpu.vector_store %arg2[%c0_5, %c0_6], %11 {strides = array<i32>} : memref<16x128xf32, #tpu.memory_space<vmem>>, vector<16x128xf32>,
    return
  }
  func.func @transform_0(%arg0: i32) -> (i32, i32) {
    %c0_i32 = arith.constant 0 : i32
    %c0_i32_0 = arith.constant 0 : i32
    return %arg0, %c0_i32 : i32, i32
  }
  func.func @transform_1(%arg0: i32) -> (i32, i32) {
    %c0_i32 = arith.constant 0 : i32
    %c0_i32_0 = arith.constant 0 : i32
    return %arg0, %c0_i32 : i32, i32
  }
}

</mosaic_0001>

<bundles_post_ra>
// kernel: tpu_custom_call.1
= control target key start
LH: loop header
LB: loop body
LE: loop exit
PB: predicated region body
PF: predicated region fallthrough
CT: control target
= control target key end

     0   :  { %6 = vsyncpa [#allocation3], 0  ;;  %s657_s0 = inlined_call_operand.hbm [shape: f32[16,128], index: 0, kind: input, shape index: {}]   ;;  %s658_s1 = inlined_call_operand.hbm [shape: f32[16,128], index: 1, kind: output, shape index: {}]  }
   0x1   :  { %7 = vsyncpa [#allocation4], 0  ;;  %s12_s8 = sshll.u32 %s657_s0, 4  ;;  %s435_s9 = smov [#allocation2]   ;;  %s13_s8 = int_to_ptr.hbm [resolvable:$true] %s12_s8 }
   0x2   :  { %s14_s10 = sshll.u32 %s435_s9, 4  ;;  %s436_s11 = smov 128   ;;  %s15_s10 = int_to_ptr.vmem [resolvable:$true] %s14_s10 }
   0x3   :  { %s437_s12 = smov 8  }
   0x4   :  { %20 = dma.hbm_to_vmem [thread:$0]  %s13_s8, 256, %s15_s10, [#allocation3], %s436_s11, %s436_s11, %s437_s12  }
   0x5   :  { %431 = dma.done.wait [#allocation3], 256  }
   0x6   :  { %432 = vsyncadd [#allocation3], 4294967040  ;;  %v462_v0 = vld [vmem:[#allocation2] sm:$0xff]  ;;  %v464_v1 = vld [vmem:[#allocation2 + $0x8] sm:$0xff]  ;;  %v438_v25 = vmov 683565275  }
   0x7   :  { %v467_v2 = vmul.f32 0.62831855, %v462_v0  ;;  %v470_v3 = vmul.f32 0.62831855, %v464_v1  ;;  %v439_v27 = vmov 2475754826  }
   0x8   :  { %v440_v29 = vmov 2131351028   ;;  %v441_v31 = vmov 2102212464   ;;  %v442_v33 = vmov 920167782  }
   0x9   :  { %v29_v4 = vand.u32 2147483647, %v467_v2  ;;  %v32_v5 = vand.u32 2139095040, %v467_v2  ;;  %v183_v6 = vand.u32 2147483647, %v470_v3  ;;  %v186_v7 = vand.u32 2139095040, %v470_v3 }
   0xa   :  { %v443_v42 = vmov 1326507024   ;;  %s445_s0 = smov [#allocation5]   ;;  %s353_s16 = sshll.u32 %s658_s1, 4  ;;  %s354_s16 = int_to_ptr.hbm [resolvable:$true] %s353_s16 }
   0xb   :  { %v33_v8 = vshrl.u32 %v32_v5, 23  ;;  %v36_v9 = vand.u32 8388607, %v29_v4  ;;  %v187_v10 = vshrl.u32 %v186_v7, 23  ;;  %v190_v14 = vand.u32 8388607, %v183_v6 }
   0xc   :  { %s351_s13 = sshll.u32 %s445_s0, 4  ;;  %s352_s13 = int_to_ptr.vmem [resolvable:$true] %s351_s13 }
   0xd   :  { %v366_v11 = vadd.s32 4294967169, %v33_v8  ;;  %v37_v12 = vor.u32 8388608, %v36_v9  ;;  %v369_v13 = vadd.s32 4294967169, %v187_v10  ;;  %v191_v19 = vor.u32 8388608, %v190_v14 }
   0xf   :  { %v39_v15 = vadd.s32 1, %v366_v11  ;;  %v193_v16 = vadd.s32 1, %v369_v13  ;;  %v480_v18 = vshll.u32 %v37_v12, 8  ;;  %v490_v36 = vshll.u32 %v191_v19, 8 }
  0x11   :  { %vm40_vm0 = vcmp.gt.s32.totalorder %v39_v15, 0  ;;  %vm194_vm1 = vcmp.gt.s32.totalorder %v193_v16, 0  ;;  %v78_v35 = vand.u32 65535, %v480_v18  ;;  %v79_v40 = vshrl.u32 %v480_v18, 16 }
  0x12   :  { %v41_v17 = vsel %vm40_vm0, %v39_v15, 0  ;;  %v195_v21 = vsel %vm194_vm1, %v193_v16, 0 }
  0x13   :  { %v43_v20 = vand.u32 31, %v41_v17  ;;  %v482_v22 = vshrl.u32 %v41_v17, 5  ;;  %v484_v23 = vand.u32 31, %v195_v21  ;;  %v508_v53 = vshrl.u32 %v195_v21, 5 }
  0x15   :  { %v44_v24 = vsub.s32 32, %v43_v20  ;;  %v46_v26 = vshll.u32 %v438_v25, %v43_v20  ;;  %v49_v28 = vshll.u32 %v439_v27, %v43_v20  ;;  %v52_v30 = vshll.u32 %v440_v29, %v43_v20 }
  0x16   :  { %v55_v32 = vshll.u32 %v441_v31, %v43_v20  ;;  %v58_v34 = vshll.u32 %v442_v33, %v43_v20  ;;  %vm61_vm2 = vcmp.lt.s32.totalorder %v482_v22, 1  ;;  %vm64_vm3 = vcmp.lt.s32.totalorder %v482_v22, 4 }
  0x17   :  { %v47_v37 = vshrl.u32 %v439_v27, %v44_v24  ;;  %v50_v38 = vshrl.u32 %v440_v29, %v44_v24  ;;  %v53_v39 = vshrl.u32 %v441_v31, %v44_v24  ;;  %v56_v41 = vshrl.u32 %v442_v33, %v44_v24 }
  0x18   :  { %v59_v43 = vshrl.u32 %v443_v42, %v44_v24  ;;  %v499_v47 = vsub.s32 32, %v484_v23  ;;  %v45_v48 = vshrl.u32 %v438_v25, %v44_v24  ;;  %vm63_vm4 = vcmp.lt.s32.totalorder %v482_v22, 3 }
  0x19   :  { %v48_v44 = vor.u32 %v47_v37, %v46_v26  ;;  %v51_v45 = vor.u32 %v50_v38, %v49_v28  ;;  %v54_v46 = vor.u32 %v53_v39, %v52_v30  ;;  %v57_v49 = vor.u32 %v56_v41, %v55_v32 }
  0x1a   :  { %v60_v50 = vor.u32 %v59_v43, %v58_v34  ;;  %vm62_vm5 = vcmp.lt.s32.totalorder %v482_v22, 2  ;;  %v200_v56 = vshll.u32 %v438_v25, %v484_v23  ;;  %v203_v57 = vshll.u32 %v439_v27, %v484_v23 }
  0x1b   :  { %v69_v51 = vsel %vm61_vm2, %v48_v44, %v51_v45  ;;  %v73_v52 = vsel %vm61_vm2, %v51_v45, %v54_v46  ;;  %v70_v54 = vsel %vm64_vm3, %v57_v49, 920167782  ;;  %v66_v58 = vsel %vm64_vm3, %v54_v46, 2102212464 }
  0x1c   :  { %v74_v55 = vsel %vm64_vm3, %v60_v50, 1326507024  ;;  %v71_v59 = vsel %vm63_vm4, %v54_v46, %v70_v54  ;;  %v201_v61 = vshrl.u32 %v439_v27, %v499_v47  ;;  %v65_v62 = vsel %vm61_vm2, %v45_v48, %v48_v44 }
  0x1d   :  { %v75_v60 = vsel %vm63_vm4, %v57_v49, %v74_v55  ;;  %v72_v63 = vsel %vm62_vm5, %v69_v51, %v71_v59  ;;  %v204_v7 = vshrl.u32 %v440_v29, %v499_v47  ;;  %v67_v12 = vsel %vm63_vm4, %v51_v45, %v66_v58 }
  0x1e   :  { %v76_v5 = vsel %vm62_vm5, %v73_v52, %v75_v60  ;;  %v102_v10 = vand.u32 65535, %v72_v63  ;;  %v103_v11 = vshrl.u32 %v72_v63, 16  ;;  %v533_v13 = vor.u32 %v201_v61, %v200_v56 }
  0x1f   :  { %v80_v8 = vand.u32 65535, %v76_v5  ;;  %v81_v9 = vshrl.u32 %v76_v5, 16  ;;  %v535_v14 = vor.u32 %v204_v7, %v203_v57  ;;  %v206_v15 = vshll.u32 %v440_v29, %v484_v23 }
  0x20   :  { %v207_v20 = vshrl.u32 %v441_v31, %v499_v47  ;;  %v104_v24 = vmul.u32 %v102_v10, %v78_v35  ;;  %v105_v26 = vmul.u32 %v103_v11, %v78_v35  ;;  %v106_v27 = vmul.u32 %v102_v10, %v79_v40 }
  0x21   :  { %v82_v16 = vmul.u32 %v80_v8, %v78_v35  ;;  %v83_v17 = vmul.u32 %v81_v9, %v78_v35  ;;  %v84_v19 = vmul.u32 %v80_v8, %v79_v40  ;;  %v85_v21 = vmul.u32 %v81_v9, %v79_v40 }
  0x22   :  { %v107_v34 = vmul.u32 %v103_v11, %v79_v40  ;;  %v108_v38 = vshll.u32 %v105_v26, 16  ;;  %v109_v39 = vshrl.u32 %v105_v26, 16  ;;  %v110_v41 = vshll.u32 %v106_v27, 16 }
  0x23   :  { %v86_v28 = vshll.u32 %v83_v17, 16  ;;  %v87_v30 = vshrl.u32 %v83_v17, 16  ;;  %v88_v32 = vshll.u32 %v84_v19, 16  ;;  %v89_v37 = vshrl.u32 %v84_v19, 16 }
  0x24   :  { %v111_v43 = vshrl.u32 %v106_v27, 16  ;;  %v209_v44 = vshll.u32 %v441_v31, %v484_v23  ;;  %v444_v45 = vmov 0   ;;  %vm112_vm7 = vc.u32 %v104_v24, %v108_v38 }
  0x25   :  { %vm90_vm6 = vc.u32 %v82_v16, %v86_v28  ;;  %v92_v29 = vadd.s32 %v86_v28, %v82_v16  ;;  %v114_v35 = vadd.s32 %v108_v38, %v104_v24  ;;  %v210_v48 = vshrl.u32 %v442_v33, %v499_v47 }
  0x26   :  { %v91_v46 = vsel %vm90_vm6, 1, %v444_v45  ;;  %v113_v40 = vsel %vm112_vm7, 1, %v444_v45  ;;  %v212_v50 = vshll.u32 %v442_v33, %v484_v23  ;;  %v208_v31 = vor.u32 %v207_v20, %v206_v15 }
  0x27   :  { %v93_v49 = vadd.s32 %v91_v46, %v85_v21  ;;  %vm94_vm8 = vc.u32 %v92_v29, %v88_v32  ;;  %v115_v52 = vadd.s32 %v113_v40, %v107_v34  ;;  %vm116_vm9 = vc.u32 %v114_v35, %v110_v41 }
  0x28   :  { %v95_v51 = vsel %vm94_vm8, 1, %v444_v45  ;;  %v117_v55 = vsel %vm116_vm9, 1, %v444_v45  ;;  %v211_v56 = vor.u32 %v210_v48, %v209_v44  ;;  %v213_v57 = vshrl.u32 %v443_v42, %v499_v47 }
  0x29   :  { %v97_v54 = vadd.s32 %v95_v51, %v93_v49  ;;  %v552_v58 = vadd.s32 %v114_v35, %v110_v41  ;;  %v119_v59 = vadd.s32 %v117_v55, %v115_v52  ;;  %vm215_vm10 = vcmp.lt.s32.totalorder %v508_v53, 1 }
  0x2a   :  { %vm217_vm11 = vcmp.lt.s32.totalorder %v508_v53, 3  ;;  %v214_v33 = vor.u32 %v213_v57, %v212_v50  ;;  %vm216_vm12 = vcmp.lt.s32.totalorder %v508_v53, 2  ;;  %vm218_vm13 = vcmp.lt.s32.totalorder %v508_v53, 4 }
  0x2b   :  { %v98_v23 = vadd.s32 %v97_v54, %v87_v30  ;;  %v68_v60 = vsel %vm62_vm5, %v65_v62, %v67_v12  ;;  %v120_v61 = vadd.s32 %v119_v59, %v109_v39  ;;  %v223_v42 = vsel %vm215_vm10, %v533_v13, %v535_v14 }
  0x2c   :  { %v224_v63 = vsel %vm218_vm13, %v211_v56, 920167782  ;;  %v227_v8 = vsel %vm215_vm10, %v535_v14, %v208_v31  ;;  %v232_v22 = vand.u32 65535, %v490_v36  ;;  %v228_v10 = vsel %vm218_vm13, %v214_v33, 1326507024 }
  0x2d   :  { %v566_v5 = vadd.s32 %v98_v23, %v89_v37  ;;  %v225_v7 = vsel %vm217_vm11, %v208_v31, %v224_v63  ;;  %v121_v62 = vadd.s32 %v120_v61, %v111_v43  ;;  %v233_v11 = vshrl.u32 %v490_v36, 16 }
  0x2e   :  { %v226_v9 = vsel %vm216_vm12, %v223_v42, %v225_v7  ;;  %v122_v12 = vmul.u32 %v480_v18, %v68_v60  ;;  %v229_v15 = vsel %vm217_vm11, %v211_v56, %v228_v10  ;;  %v199_v27 = vshrl.u32 %v438_v25, %v499_v47 }
  0x2f   :  { %vm124_vm14 = vc.u32 %v566_v5, %v552_v58  ;;  %v256_v16 = vand.u32 65535, %v226_v9  ;;  %v125_v17 = vadd.s32 1, %v121_v62  ;;  %v230_v19 = vsel %vm216_vm12, %v227_v8, %v229_v15 }
  0x30   :  { %v257_v20 = vshrl.u32 %v226_v9, 16  ;;  %v234_v21 = vand.u32 65535, %v230_v19  ;;  %v235_v24 = vshrl.u32 %v230_v19, 16  ;;  %v220_v29 = vsel %vm218_vm13, %v208_v31, 2102212464 }
  0x31   :  { %v126_v26 = vsel %vm124_vm14, %v125_v17, %v121_v62  ;;  %v260_v18 = vmul.u32 %v256_v16, %v233_v11  ;;  %v258_v37 = vmul.u32 %v256_v16, %v232_v22  ;;  %v219_v46 = vsel %vm215_vm10, %v199_v27, %v533_v13 }
  0x32   :  { %v259_v28 = vmul.u32 %v257_v20, %v232_v22  ;;  %v127_v30 = vadd.s32 %v126_v26, %v122_v12  ;;  %v236_v32 = vmul.u32 %v234_v21, %v232_v22  ;;  %v237_v34 = vmul.u32 %v235_v24, %v232_v22 }
  0x33   :  { %v238_v38 = vmul.u32 %v234_v21, %v233_v11  ;;  %v239_v43 = vmul.u32 %v235_v24, %v233_v11  ;;  %v261_v25 = vmul.u32 %v257_v20, %v233_v11  ;;  %v264_v47 = vshll.u32 %v260_v18, 16 }
  0x34   :  { %v262_v39 = vshll.u32 %v259_v28, 16  ;;  %v128_v41 = vadd.s32 536870912, %v127_v30  ;;  %v240_v44 = vshll.u32 %v237_v34, 16  ;;  %v221_v40 = vsel %vm217_vm11, %v535_v14, %v220_v29 }
  0x35   :  { %v242_v35 = vshll.u32 %v238_v38, 16  ;;  %v241_v13 = vshrl.u32 %v237_v34, 16  ;;  %v263_v56 = vshrl.u32 %v259_v28, 16  ;;  %v243_v23 = vshrl.u32 %v238_v38, 16 }
  0x36   :  { %v593_v48 = vshrl.u32 %v128_v41, 30  ;;  %vm244_vm15 = vc.u32 %v236_v32, %v240_v44  ;;  %v246_v49 = vadd.s32 %v240_v44, %v236_v32  ;;  %vm266_vm0 = vc.u32 %v258_v37, %v262_v39 }
  0x37   :  { %v245_v50 = vsel %vm244_vm15, 1, %v444_v45  ;;  %v267_v51 = vsel %vm266_vm0, 1, %v444_v45  ;;  %v268_v52 = vadd.s32 %v262_v39, %v258_v37  ;;  %v265_v60 = vshrl.u32 %v260_v18, 16 }
  0x38   :  { %v130_v31 = vshll.u32 %v593_v48, 30  ;;  %v247_v54 = vadd.s32 %v245_v50, %v239_v43  ;;  %vm248_vm1 = vc.u32 %v246_v49, %v242_v35  ;;  %v269_v57 = vadd.s32 %v267_v51, %v261_v25 }
  0x39   :  { %v249_v55 = vsel %vm248_vm1, 1, %v444_v45  ;;  %vm270_vm2 = vc.u32 %v268_v52, %v264_v47  ;;  %v272_v7 = vadd.s32 %v268_v52, %v264_v47  ;;  %v222_v8 = vsel %vm216_vm12, %v219_v46, %v221_v40 }
  0x3a   :  { %v131_v59 = vsub.s32 %v127_v30, %v130_v31  ;;  %v251_v33 = vadd.s32 %v249_v55, %v247_v54  ;;  %v271_v14 = vsel %vm270_vm2, 1, %v444_v45  ;;  %v276_v12 = vmul.u32 %v490_v36, %v222_v8 }
  0x3b   :  { %v273_v61 = vadd.s32 %v271_v14, %v269_v57  ;;  %v123_v45 = vadd.s32 %v552_v58, %v566_v5  ;;  %vm31_vm7 = vcmp.lt.s32.totalorder %v467_v2, 0  ;;  %vm614_vm8 = vcmp.le.f32.partialorder %v29_v4, 0.7853982 }
  0x3c   :  { %vm132_vm3 = vcmp.lt.s32.totalorder %v131_v59, 0  ;;  %v133_v42 = vsub.s32 0, %v131_v59  ;;  %v252_v63 = vadd.s32 %v251_v33, %v241_v13  ;;  %v153_v25 = vsub.s32 4, %v593_v48 }
  0x3d   :  { %v274_v22 = vadd.s32 %v273_v61, %v263_v56  ;;  %vm185_vm11 = vcmp.lt.s32.totalorder %v470_v3, 0  ;;  %vm632_vm13 = vcmp.le.f32.partialorder %v183_v6, 0.7853982  ;;  %vm172_vm15 = vweird.f32 %v467_v2 }
  0x3e   :  { %v134_v62 = vsel %vm132_vm3, %v133_v42, %v131_v59  ;;  %v253_v9 = vadd.s32 %v252_v63, %v243_v23  ;;  %v154_v13 = vsel %vm31_vm7, %v153_v25, %v593_v48  ;;  %vm341_vm0 = vcmp.lt.f32.partialorder %v462_v0, 5.0 }
  0x3f   :  { %v135_v10 = vclz %v134_v62  ;;  %v275_v11 = vadd.s32 %v274_v22, %v265_v60  ;;  %v156_v23 = vsel %vm614_vm8, 0, %v154_v13 }
  0x40   :  { %vm278_vm4 = vc.u32 %v253_v9, %v272_v7  ;;  %v277_v40 = vadd.s32 %v272_v7, %v253_v9  ;;  %v173_v7 = vand.u32 3, %v156_v23 }
  0x41   :  { %v367_v15 = vadd.s32 4294967294, %v135_v10  ;;  %v279_v16 = vadd.s32 1, %v275_v11 }
  0x42   :  { %vm178_vm10 = vcmp.eq.s32.totalorder %v173_v7, 2  ;;  %vm175_vm12 = vcmp.eq.s32.totalorder %v173_v7, 0  ;;  %vm174_vm14 = vcmp.lt.s32.totalorder %v173_v7, 2 }
  0x43   :  { %vm368_vm5 = vcmp.lt.s32.totalorder %v367_v15, 0  ;;  %v280_v17 = vsel %vm278_vm4, %v279_v16, %v275_v11  ;;  %vm326_vm4 = vweird.f32 %v470_v3 }
  0x44   :  { %v138_v19 = vsel %vm368_vm5, 0, %v367_v15  ;;  %v281_v20 = vadd.s32 %v280_v17, %v276_v12  ;;  %vm342_vm5 = vcmp.lt.f32.partialorder %v464_v1, 5.0 }
  0x45   :  { %v139_v21 = vsub.s32 32, %v138_v19  ;;  %v140_v53 = vshll.u32 %v131_v59, %v138_v19  ;;  %v143_v24 = vsub.s32 4294967266, %v138_v19 }
  0x46   :  { %v282_v26 = vadd.s32 536870912, %v281_v20 }
  0x47   :  { %v141_v27 = vshrl.u32 %v123_v45, %v139_v21  ;;  %v144_v28 = vadd.s32 127, %v143_v24 }
  0x48   :  { %v608_v18 = vshrl.u32 %v282_v26, 30 }
  0x49   :  { %v142_v30 = vor.u32 %v141_v27, %v140_v53  ;;  %v145_v36 = vshll.u32 %v144_v28, 23 }
  0x4a   :  { %v284_v32 = vshll.u32 %v608_v18, 30  ;;  %v307_v24 = vsub.s32 4, %v608_v18 }
  0x4b   :  { %v146_v34 = vor.u32 4788187, %v145_v36  ;;  %v149_v37 = vcvt.s32.f32 %v142_v30 }
  0x4c   :  { %v285_v38 = vsub.s32 %v281_v20, %v284_v32 }
  0x4d   :  { %v147_v58 = vand.u32 2147483647, %v146_v34 }
  0x4e   :  { %vm286_vm6 = vcmp.lt.s32.totalorder %v285_v38, 0  ;;  %v287_v5 = vsub.s32 0, %v285_v38 }
  0x4f   :  { %v150_v39 = vmul.f32 %v149_v37, %v147_v58 }
  0x50   :  { %v288_v41 = vsel %vm286_vm6, %v287_v5, %v285_v38 }
  0x51   :  { %v151_v43 = vxor.u32 2147483648, %v150_v39  ;;  %v289_v44 = vclz %v288_v41 }
  0x53   :  { %v152_v46 = vsel %vm31_vm7, %v151_v43, %v150_v39  ;;  %v370_v35 = vadd.s32 4294967294, %v289_v44 }
  0x54   :  { %v155_v47 = vsel %vm614_vm8, %v467_v2, %v152_v46  ;;  %v308_v2 = vsel %vm185_vm11, %v307_v24, %v608_v18 }
  0x55   :  { %v157_v49 = vmul.f32 %v155_v47, %v155_v47  ;;  %vm371_vm9 = vcmp.lt.s32.totalorder %v370_v35, 0  ;;  %v310_v58 = vsel %vm632_vm13, 0, %v308_v2 }
  0x56   :  { %v292_v50 = vsel %vm371_vm9, 0, %v370_v35  ;;  %v327_v44 = vand.u32 3, %v310_v58 }
  0x57   :  { %v158_v4 = vmul.f32 -0.001358992, %v157_v49  ;;  %v165_v51 = vmul.f32 -0.00019511016, %v157_v49  ;;  %v293_v52 = vsub.s32 32, %v292_v50  ;;  %v294_v31 = vshll.u32 %v285_v38, %v292_v50 }
  0x58   :  { %v297_v54 = vsub.s32 4294967266, %v292_v50  ;;  %vm332_vm1 = vcmp.eq.s32.totalorder %v327_v44, 2  ;;  %vm329_vm2 = vcmp.eq.s32.totalorder %v327_v44, 0  ;;  %vm328_vm3 = vcmp.lt.s32.totalorder %v327_v44, 2 }
  0x59   :  { %v159_v55 = vadd.f32 0.041655596, %v158_v4  ;;  %v166_v56 = vadd.f32 0.008332121, %v165_v51  ;;  %v295_v57 = vshrl.u32 %v277_v40, %v293_v52 }
  0x5a   :  { %v298_v59 = vadd.s32 127, %v297_v54 }
  0x5b   :  { %v160_v33 = vmul.f32 %v159_v55, %v157_v49  ;;  %v167_v14 = vmul.f32 %v166_v56, %v157_v49  ;;  %v296_v60 = vor.u32 %v295_v57, %v294_v31 }
  0x5c   :  { %v299_v61 = vshll.u32 %v298_v59, 23 }
  0x5d   :  { %v161_v42 = vadd.f32 -0.4999988, %v160_v33  ;;  %v168_v63 = vadd.f32 -0.16666654, %v167_v14  ;;  %v303_v22 = vcvt.s32.f32 %v296_v60 }
  0x5e   :  { %v300_v8 = vor.u32 4788187, %v299_v61 }
  0x5f   :  { %v162_v62 = vmul.f32 %v161_v42, %v157_v49  ;;  %v169_v9 = vmul.f32 %v168_v63, %v157_v49 }
  0x60   :  { %v301_v48 = vand.u32 2147483647, %v300_v8 }
  0x61   :  { %v163_v10 = vadd.f32 1.0, %v162_v62  ;;  %v170_v11 = vadd.f32 1.0, %v169_v9 }
  0x62   :  { %v304_v12 = vmul.f32 %v303_v22, %v301_v48 }
  0x63   :  { %v171_v15 = vmul.f32 %v170_v11, %v155_v47  ;;  %v179_v16 = vxor.u32 2147483648, %v163_v10 }
  0x64   :  { %v305_v17 = vxor.u32 2147483648, %v304_v12 }
  0x65   :  { %v176_v19 = vxor.u32 2147483648, %v171_v15  ;;  %v180_v20 = vsel %vm178_vm10, %v179_v16, %v171_v15 }
  0x66   :  { %v306_v21 = vsel %vm185_vm11, %v305_v17, %v304_v12 }
  0x67   :  { %v177_v53 = vsel %vm175_vm12, %v163_v10, %v176_v19  ;;  %v309_v26 = vsel %vm632_vm13, %v470_v3, %v306_v21 }
  0x68   :  { %v181_v6 = vsel %vm174_vm14, %v177_v53, %v180_v20  ;;  %v311_v27 = vmul.f32 %v309_v26, %v309_v26 }
  0x69   :  { %v182_v28 = vsel %vm172_vm15, nan, %v181_v6 }
  0x6a   :  { %v312_v30 = vmul.f32 -0.001358992, %v311_v27  ;;  %v319_v36 = vmul.f32 -0.00019511016, %v311_v27  ;;  %v337_v32 = vadd.f32 1.0, %v182_v28 }
  0x6c   :  { %v313_v34 = vadd.f32 0.041655596, %v312_v30  ;;  %v320_v37 = vadd.f32 0.008332121, %v319_v36  ;;  %v339_v38 = vmul.f32 0.5, %v337_v32 }
  0x6e   :  { %v314_v5 = vmul.f32 %v313_v34, %v311_v27  ;;  %v321_v39 = vmul.f32 %v320_v37, %v311_v27  ;;  %v343_v41 = vsel %vm341_vm0, %v339_v38, 0.0 }
  0x6f   :  { %345 = vst [vmem:[#allocation5] sm:$0xff] %v343_v41 }
  0x70   :  { %v315_v29 = vadd.f32 -0.4999988, %v314_v5  ;;  %v322_v43 = vadd.f32 -0.16666654, %v321_v39 }
  0x72   :  { %v316_v46 = vmul.f32 %v315_v29, %v311_v27  ;;  %v323_v35 = vmul.f32 %v322_v43, %v311_v27 }
  0x74   :  { %v317_v25 = vadd.f32 1.0, %v316_v46  ;;  %v324_v47 = vadd.f32 1.0, %v323_v35 }
  0x76   :  { %v325_v18 = vmul.f32 %v324_v47, %v309_v26  ;;  %v333_v0 = vxor.u32 2147483648, %v317_v25 }
  0x78   :  { %v330_v49 = vxor.u32 2147483648, %v325_v18  ;;  %v334_v40 = vsel %vm332_vm1, %v333_v0, %v325_v18 }
  0x7a   :  { %v331_v50 = vsel %vm329_vm2, %v317_v25, %v330_v49 }
  0x7b   :  { %v335_v4 = vsel %vm328_vm3, %v331_v50, %v334_v40 }
  0x7c   :  { %v336_v51 = vsel %vm326_vm4, nan, %v335_v4 }
  0x7d   :  { %v338_v52 = vadd.f32 1.0, %v336_v51 }
  0x7f   :  { %v340_v31 = vmul.f32 0.5, %v338_v52 }
  0x81   :  { %v344_v13 = vsel %vm342_vm5, %v340_v31, 0.0 }
  0x82   :  { %346 = vst [vmem:[#allocation5 + $0x8] sm:$0xff] %v344_v13 }
  0x83   :  { %359 = dma.vmem_to_hbm [thread:$0]  %s352_s13, 256, %s354_s16, [#allocation4], %s436_s11, %s436_s11, %s437_s12  }
  0x84   :  { %433 = dma.done.wait [#allocation4], 256  }
  0x85   :  { %434 = vsyncadd [#allocation4], 4294967040 }
  0x86   :  { %364 = vsyncpa [#allocation3], 1 }
  0x87   :  { %365 = vsyncpa [#allocation4], 1 }

</bundles_post_ra>
